<compile_context>
chip_gen: v7x
topology: tpu7x:2x2x1
jax: 0.10.0
libtpu: 0.0.40
codegen_flags: <defaults>
</compile_context>

<pallas_src>
import math

import numpy as np
import jax
import jax.numpy as jnp
from jax.experimental import pallas as pl
from jax.experimental.pallas import tpu as pltpu

MATMUL_DTYPE = jnp.bfloat16       # MXU operand dtype (accumulation stays f32)
VMEM_LIMIT = 32 * 1024 * 1024     # explicit scoped-VMEM budget, safe v5e..v7x
MAX_BATCH_TILE = 256              # sublane tile over the batch axis


# ----------------------------------------------------------------------------
# Batch-tile picker: big tiles, but >= 2 grid steps when possible (v7x 2 TCs)
# ----------------------------------------------------------------------------
def _pick_batch_tile(batch):
    if batch <= 8:
        return batch                       # block equals full dim -> allowed
    tb = min(batch, MAX_BATCH_TILE)
    if batch < 2 * tb:                     # ensure the parallel axis has >= 2 steps
        tb = max(8, (batch // 2) // 8 * 8)
    return tb


# ----------------------------------------------------------------------------
# The single fused kernel:  out = relu(W_L @ ... relu(W_1 @ x + b_1) ... + b_L)
#   activations: (TB, features)  -- batch on sublanes, features lane-dense
#   weights:     (in_f, out_f)   -- resident (constant index map)
#   biases:      (1, out_f)      -- resident, broadcast over batch rows
# ----------------------------------------------------------------------------
def _make_encoder_kernel(num_layers):
    def kernel(*refs):
        x_ref = refs[0]
        w_refs = refs[1:1 + num_layers]
        b_refs = refs[1 + num_layers:1 + 2 * num_layers]
        o_ref = refs[1 + 2 * num_layers]

        h = x_ref[...].astype(MATMUL_DTYPE)
        acc = None
        for li in range(num_layers):
            acc = jnp.dot(h, w_refs[li][...],
                          preferred_element_type=jnp.float32)
            acc = jnp.maximum(acc + b_refs[li][...], 0.0)     # bias + ReLU
            if li + 1 < num_layers:
                h = acc.astype(MATMUL_DTYPE)                  # bf16 between layers
        o_ref[...] = acc                                      # final f32
    return kernel


def fused_encoder(weights, biases, x_flat):
    """weights[i]: (in_i, out_i) bf16, biases[i]: (1, out_i) f32,
    x_flat: (B, in_0) f32  ->  (B, out_last) f32."""
    B, in0 = x_flat.shape
    num_layers = len(weights)
    out_f = weights[-1].shape[1]
    tb = _pick_batch_tile(B)
    grid_b = pl.cdiv(B, tb)

    in_specs = [pl.BlockSpec((tb, in0), lambda i: (i, 0))]
    for w in weights:
        kin, kout = w.shape
        in_specs.append(pl.BlockSpec((kin, kout), lambda i: (0, 0)))   # resident
    for b in biases:
        in_specs.append(pl.BlockSpec((1, b.shape[1]), lambda i: (0, 0)))

    cost = pl.CostEstimate(
        flops=2 * B * sum(w.shape[0] * w.shape[1] for w in weights),
        transcendentals=0,
        bytes_accessed=(x_flat.size * x_flat.dtype.itemsize
                        + sum(w.size * w.dtype.itemsize for w in weights)
                        + sum(b.size * 4 for b in biases)
                        + B * out_f * 4),
    )

    return pl.pallas_call(
        _make_encoder_kernel(num_layers),
        out_shape=jax.ShapeDtypeStruct((B, out_f), jnp.float32),
        grid=(grid_b,),
        in_specs=in_specs,
        out_specs=pl.BlockSpec((tb, out_f), lambda i: (i, 0)),
        compiler_params=pltpu.CompilerParams(
            dimension_semantics=("parallel",),
            vmem_limit_bytes=VMEM_LIMIT),
        cost_estimate=cost,
    )(x_flat, *weights, *biases)


# ----------------------------------------------------------------------------
# Weight prep (outside jit): lower every Conv2d(4, 2, 1) to its exact dense
# matrix over (c,h,w)-flattened activations.
# ----------------------------------------------------------------------------
def _conv_to_dense(w, H, W):
    """w: (Cout, Cin, 4, 4) -> D: (Cin*H*W, Cout*Ho*Wo) with out = x_flat @ D."""
    Cout, Cin, KH, KW = w.shape
    Ho, Wo = H // 2, W // 2
    wt = np.transpose(np.asarray(w, np.float32), (1, 0, 2, 3))   # (Cin, Cout, KH, KW)
    D = np.zeros((Cin, H, W, Cout, Ho, Wo), np.float32)
    for kh in range(KH):
        for kw in range(KW):
            for ho in range(Ho):
                hi = 2 * ho + kh - 1            # padding = 1, stride = 2
                if hi < 0 or hi >= H:
                    continue
                for wo in range(Wo):
                    wi = 2 * wo + kw - 1
                    if wi < 0 or wi >= W:
                        continue
                    D[:, hi, wi, :, ho, wo] = wt[:, :, kh, kw]
    return D.reshape(Cin * H * W, Cout * Ho * Wo)


def init_encoder_params(input_size, key):
    """Synthetic parameters with the exact PyTorch `Encoder` shapes."""
    num_conv = int(round(math.log2(input_size)))
    assert 2 ** num_conv == input_size, "input_size must be a power of two"
    params = {"convs": []}
    for i in range(1, num_conv + 1):
        cin = 1 if i == 1 else int(2 ** i)
        cout = int(2 ** (i + 1))
        key, kw, kb = jax.random.split(key, 3)
        w = jax.random.normal(kw, (cout, cin, 4, 4), jnp.float32) * 0.1
        b = jax.random.normal(kb, (cout,), jnp.float32) * 0.01
        params["convs"].append((w, b))
    flatten_size = int(2 ** (num_conv + 1))
    key, kw, kb = jax.random.split(key, 3)
    params["linear1"] = (
        jax.random.normal(kw, (64, flatten_size), jnp.float32) * 0.1,   # (out, in)
        jax.random.normal(kb, (64,), jnp.float32) * 0.01,
    )
    return params


def prepare_params(params, input_size):
    """One-time (outside jit) lowering of weights into fused-kernel layout."""
    H = W = int(input_size)
    weights, biases = [], []
    for (w, b) in params["convs"]:
        assert H % 2 == 0 and W % 2 == 0 and w.shape[2:] == (4, 4)
        Ho, Wo = H // 2, W // 2
        weights.append(jnp.asarray(_conv_to_dense(w, H, W), MATMUL_DTYPE))
        biases.append(jnp.asarray(
            np.repeat(np.asarray(b, np.float32), Ho * Wo).reshape(1, -1)))
        H, W = Ho, Wo
    assert H == 1 and W == 1, "Encoder expects log2(input_size) conv layers"
    wl, bl = params["linear1"]
    assert wl.shape[1] == params["convs"][-1][0].shape[0]
    weights.append(jnp.asarray(np.asarray(wl, np.float32).T, MATMUL_DTYPE))
    biases.append(jnp.asarray(np.asarray(bl, np.float32).reshape(1, -1)))
    # Dense lowering is only sensible while the weights stay resident-small.
    assert sum(int(w.size) * 2 for w in weights) < 8 * 1024 * 1024, \
        "dense conv lowering too large; use windowed im2col variant"
    return {"weights": weights, "biases": biases}


@jax.jit
def encoder_forward(prepared, x):
    """x: (B, 1, S, S) NCHW float32 -> (B, 64) float32."""
    B = x.shape[0]
    x_flat = x.reshape(B, -1)     # (c,h,w)-flatten; metadata-only reshape
    return fused_encoder(prepared["weights"], prepared["biases"], x_flat)


# ----------------------------------------------------------------------------
# Plain-JAX f32 reference (for a tolerance check against the bf16 kernel)
# ----------------------------------------------------------------------------
def _reference_forward(params, x):
    h = x
    for (w, b) in params["convs"]:
        h = jax.lax.conv_general_dilated(
            h, w, window_strides=(2, 2), padding=((1, 1), (1, 1)),
            dimension_numbers=("NCHW", "OIHW", "NCHW"))
        h = jnp.maximum(h + b.reshape(1, -1, 1, 1), 0.0)
    h = h.reshape(h.shape[0], -1)
    wl, bl = params["linear1"]
    return jnp.maximum(h @ wl.T + bl, 0.0)


if __name__ == "__main__":
    INPUT_SIZE = 16   # 4 convs: 1->4->8->16->32 channels, flatten_size = 32
    BATCH = 16        # gives a 2-step parallel batch grid (exercises pipelining)

    key = jax.random.PRNGKey(0)
    key, kx = jax.random.split(key)
    x = jax.random.normal(kx, (BATCH, 1, INPUT_SIZE, INPUT_SIZE), jnp.float32)

    params = init_encoder_params(INPUT_SIZE, key)
    prepared = prepare_params(params, INPUT_SIZE)   # dense kernel-layout weights

    out = encoder_forward(prepared, x)
    out = jax.block_until_ready(out)

    assert out.shape == (BATCH, 64), out.shape
    assert out.dtype == jnp.float32
    assert bool(jnp.all(out >= 0.0))                # final ReLU

    # Loose tolerance: kernel uses bf16 MXU operands (f32 accumulation).
    ref = _reference_forward(params, x)
    rel = jnp.linalg.norm(out - ref) / jnp.maximum(jnp.linalg.norm(ref), 1e-6)
    assert float(rel) < 0.08, f"kernel/reference mismatch: rel_l2={float(rel):.4f}"

    print("KERNEL_OK")
</pallas_src>

<mosaic_0001>
module attributes {stable_mosaic.version = 11 : i64} {
  func.func @kernel(%arg0: i32, %arg1: memref<8x256xf32, #tpu.memory_space<vmem>>, %arg2: memref<256x256xbf16, #tpu.memory_space<vmem>>, %arg3: memref<256x128xbf16, #tpu.memory_space<vmem>>, %arg4: memref<128x64xbf16, #tpu.memory_space<vmem>>, %arg5: memref<64x32xbf16, #tpu.memory_space<vmem>>, %arg6: memref<32x64xbf16, #tpu.memory_space<vmem>>, %arg7: memref<1x256xf32, #tpu.memory_space<vmem>>, %arg8: memref<1x128xf32, #tpu.memory_space<vmem>>, %arg9: memref<1x64xf32, #tpu.memory_space<vmem>>, %arg10: memref<1x32xf32, #tpu.memory_space<vmem>>, %arg11: memref<1x64xf32, #tpu.memory_space<vmem>>, %arg12: memref<8x64xf32, #tpu.memory_space<vmem>>) attributes {dimension_semantics = [#tpu.dimension_semantics<parallel>], iteration_bounds = array<i64: 2>, scalar_prefetch = 0 : i64, scratch_operands = 0 : i64, tpu.core_type = #tpu.core_type<tc>, window_params = [{transform_indices = @transform_0, window_bounds = array<i64: 8, 256>}, {pipeline_mode = #tpu.pipeline_mode<synchronous>, transform_indices = @transform_1, window_bounds = array<i64: 256, 256>}, {pipeline_mode = #tpu.pipeline_mode<synchronous>, transform_indices = @transform_2, window_bounds = array<i64: 256, 128>}, {pipeline_mode = #tpu.pipeline_mode<synchronous>, transform_indices = @transform_3, window_bounds = array<i64: 128, 64>}, {pipeline_mode = #tpu.pipeline_mode<synchronous>, transform_indices = @transform_4, window_bounds = array<i64: 64, 32>}, {pipeline_mode = #tpu.pipeline_mode<synchronous>, transform_indices = @transform_5, window_bounds = array<i64: 32, 64>}, {pipeline_mode = #tpu.pipeline_mode<synchronous>, transform_indices = @transform_6, window_bounds = array<i64: 1, 256>}, {pipeline_mode = #tpu.pipeline_mode<synchronous>, transform_indices = @transform_7, window_bounds = array<i64: 1, 128>}, {pipeline_mode = #tpu.pipeline_mode<synchronous>, transform_indices = @transform_8, window_bounds = array<i64: 1, 64>}, {pipeline_mode = #tpu.pipeline_mode<synchronous>, transform_indices = @transform_9, window_bounds = array<i64: 1, 32>}, {pipeline_mode = #tpu.pipeline_mode<synchronous>, transform_indices = @transform_10, window_bounds = array<i64: 1, 64>}, {transform_indices = @transform_11, window_bounds = array<i64: 8, 64>}]} {
    %c0 = arith.constant 0 : index
    %c0_0 = arith.constant 0 : index
    %0 = vector.load %arg1[%c0, %c0_0] : memref<8x256xf32, #tpu.memory_space<vmem>>, vector<8x256xf32>
    %1 = arith.truncf %0 : vector<8x256xf32> to vector<8x256xbf16>
    %c0_1 = arith.constant 0 : index
    %c0_2 = arith.constant 0 : index
    %2 = vector.load %arg2[%c0_1, %c0_2] : memref<256x256xbf16, #tpu.memory_space<vmem>>, vector<256x256xbf16>
    %cst = arith.constant dense<0.000000e+00> : vector<8x256xf32>
    %3 = tpu.matmul %1, %2, %cst {dimension_numbers = #tpu.dot_dimension_numbers<[1], [0], [0], [1], [0, 0, 1, 1], [], []>} : vector<8x256xbf16>, vector<256x256xbf16>, vector<8x256xf32> -> vector<8x256xf32>
    %c0_3 = arith.constant 0 : index
    %c0_4 = arith.constant 0 : index
    %4 = vector.load %arg7[%c0_3, %c0_4] : memref<1x256xf32, #tpu.memory_space<vmem>>, vector<1x256xf32>
    %5 = vector.broadcast %4 : vector<1x256xf32> to vector<8x256xf32>
    %6 = arith.addf %3, %5 : vector<8x256xf32>
    %cst_5 = arith.constant 0.000000e+00 : f32
    %7 = vector.broadcast %cst_5 : f32 to vector<8x256xf32>
    %8 = arith.maximumf %6, %7 : vector<8x256xf32>
    %9 = arith.truncf %8 : vector<8x256xf32> to vector<8x256xbf16>
    %c0_6 = arith.constant 0 : index
    %c0_7 = arith.constant 0 : index
    %10 = vector.load %arg3[%c0_6, %c0_7] : memref<256x128xbf16, #tpu.memory_space<vmem>>, vector<256x128xbf16>
    %cst_8 = arith.constant dense<0.000000e+00> : vector<8x128xf32>
    %11 = tpu.matmul %9, %10, %cst_8 {dimension_numbers = #tpu.dot_dimension_numbers<[1], [0], [0], [1], [0, 0, 1, 1], [], []>} : vector<8x256xbf16>, vector<256x128xbf16>, vector<8x128xf32> -> vector<8x128xf32>
    %c0_9 = arith.constant 0 : index
    %c0_10 = arith.constant 0 : index
    %12 = vector.load %arg8[%c0_9, %c0_10] : memref<1x128xf32, #tpu.memory_space<vmem>>, vector<1x128xf32>
    %13 = vector.broadcast %12 : vector<1x128xf32> to vector<8x128xf32>
    %14 = arith.addf %11, %13 : vector<8x128xf32>
    %cst_11 = arith.constant 0.000000e+00 : f32
    %15 = vector.broadcast %cst_11 : f32 to vector<8x128xf32>
    %16 = arith.maximumf %14, %15 : vector<8x128xf32>
    %17 = arith.truncf %16 : vector<8x128xf32> to vector<8x128xbf16>
    %c0_12 = arith.constant 0 : index
    %c0_13 = arith.constant 0 : index
    %18 = vector.load %arg4[%c0_12, %c0_13] : memref<128x64xbf16, #tpu.memory_space<vmem>>, vector<128x64xbf16>
    %cst_14 = arith.constant dense<0.000000e+00> : vector<8x64xf32>
    %19 = tpu.matmul %17, %18, %cst_14 {dimension_numbers = #tpu.dot_dimension_numbers<[1], [0], [0], [1], [0, 0, 1, 1], [], []>} : vector<8x128xbf16>, vector<128x64xbf16>, vector<8x64xf32> -> vector<8x64xf32>
    %c0_15 = arith.constant 0 : index
    %c0_16 = arith.constant 0 : index
    %20 = vector.load %arg9[%c0_15, %c0_16] : memref<1x64xf32, #tpu.memory_space<vmem>>, vector<1x64xf32>
    %21 = vector.broadcast %20 : vector<1x64xf32> to vector<8x64xf32>
    %22 = arith.addf %19, %21 : vector<8x64xf32>
    %cst_17 = arith.constant 0.000000e+00 : f32
    %23 = vector.broadcast %cst_17 : f32 to vector<8x64xf32>
    %24 = arith.maximumf %22, %23 : vector<8x64xf32>
    %25 = arith.truncf %24 : vector<8x64xf32> to vector<8x64xbf16>
    %c0_18 = arith.constant 0 : index
    %c0_19 = arith.constant 0 : index
    %26 = vector.load %arg5[%c0_18, %c0_19] : memref<64x32xbf16, #tpu.memory_space<vmem>>, vector<64x32xbf16>
    %cst_20 = arith.constant dense<0.000000e+00> : vector<8x32xf32>
    %27 = tpu.matmul %25, %26, %cst_20 {dimension_numbers = #tpu.dot_dimension_numbers<[1], [0], [0], [1], [0, 0, 1, 1], [], []>} : vector<8x64xbf16>, vector<64x32xbf16>, vector<8x32xf32> -> vector<8x32xf32>
    %c0_21 = arith.constant 0 : index
    %c0_22 = arith.constant 0 : index
    %28 = vector.load %arg10[%c0_21, %c0_22] : memref<1x32xf32, #tpu.memory_space<vmem>>, vector<1x32xf32>
    %29 = vector.broadcast %28 : vector<1x32xf32> to vector<8x32xf32>
    %30 = arith.addf %27, %29 : vector<8x32xf32>
    %cst_23 = arith.constant 0.000000e+00 : f32
    %31 = vector.broadcast %cst_23 : f32 to vector<8x32xf32>
    %32 = arith.maximumf %30, %31 : vector<8x32xf32>
    %33 = arith.truncf %32 : vector<8x32xf32> to vector<8x32xbf16>
    %c0_24 = arith.constant 0 : index
    %c0_25 = arith.constant 0 : index
    %34 = vector.load %arg6[%c0_24, %c0_25] : memref<32x64xbf16, #tpu.memory_space<vmem>>, vector<32x64xbf16>
    %cst_26 = arith.constant dense<0.000000e+00> : vector<8x64xf32>
    %35 = tpu.matmul %33, %34, %cst_26 {dimension_numbers = #tpu.dot_dimension_numbers<[1], [0], [0], [1], [0, 0, 1, 1], [], []>} : vector<8x32xbf16>, vector<32x64xbf16>, vector<8x64xf32> -> vector<8x64xf32>
    %c0_27 = arith.constant 0 : index
    %c0_28 = arith.constant 0 : index
    %36 = vector.load %arg11[%c0_27, %c0_28] : memref<1x64xf32, #tpu.memory_space<vmem>>, vector<1x64xf32>
    %37 = vector.broadcast %36 : vector<1x64xf32> to vector<8x64xf32>
    %38 = arith.addf %35, %37 : vector<8x64xf32>
    %cst_29 = arith.constant 0.000000e+00 : f32
    %39 = vector.broadcast %cst_29 : f32 to vector<8x64xf32>
    %40 = arith.maximumf %38, %39 : vector<8x64xf32>
    %c0_30 = arith.constant 0 : index
    %c0_31 = arith.constant 0 : index
    %41 = vector.load %arg12[%c0_30, %c0_31] : memref<8x64xf32, #tpu.memory_space<vmem>>, vector<8x64xf32>
    tpu.vector_store %arg12[%c0_30, %c0_31], %40 {strides = array<i32>} : memref<8x64xf32, #tpu.memory_space<vmem>>, vector<8x64xf32>,
    return
  }
  func.func @transform_0(%arg0: i32) -> (i32, i32) {
    %c0_i32 = arith.constant 0 : i32
    %c0_i32_0 = arith.constant 0 : i32
    return %arg0, %c0_i32 : i32, i32
  }
  func.func @transform_1(%arg0: i32) -> (i32, i32) {
    %c0_i32 = arith.constant 0 : i32
    %c0_i32_0 = arith.constant 0 : i32
    %c0_i32_1 = arith.constant 0 : i32
    return %c0_i32, %c0_i32_0 : i32, i32
  }
  func.func @transform_2(%arg0: i32) -> (i32, i32) {
    %c0_i32 = arith.constant 0 : i32
    %c0_i32_0 = arith.constant 0 : i32
    %c0_i32_1 = arith.constant 0 : i32
    return %c0_i32, %c0_i32_0 : i32, i32
  }
  func.func @transform_3(%arg0: i32) -> (i32, i32) {
    %c0_i32 = arith.constant 0 : i32
    %c0_i32_0 = arith.constant 0 : i32
    %c0_i32_1 = arith.constant 0 : i32
    return %c0_i32, %c0_i32_0 : i32, i32
  }
  func.func @transform_4(%arg0: i32) -> (i32, i32) {
    %c0_i32 = arith.constant 0 : i32
    %c0_i32_0 = arith.constant 0 : i32
    %c0_i32_1 = arith.constant 0 : i32
    return %c0_i32, %c0_i32_0 : i32, i32
  }
  func.func @transform_5(%arg0: i32) -> (i32, i32) {
    %c0_i32 = arith.constant 0 : i32
    %c0_i32_0 = arith.constant 0 : i32
    %c0_i32_1 = arith.constant 0 : i32
    return %c0_i32, %c0_i32_0 : i32, i32
  }
  func.func @transform_6(%arg0: i32) -> (i32, i32) {
    %c0_i32 = arith.constant 0 : i32
    %c0_i32_0 = arith.constant 0 : i32
    %c0_i32_1 = arith.constant 0 : i32
    return %c0_i32, %c0_i32_0 : i32, i32
  }
  func.func @transform_7(%arg0: i32) -> (i32, i32) {
    %c0_i32 = arith.constant 0 : i32
    %c0_i32_0 = arith.constant 0 : i32
    %c0_i32_1 = arith.constant 0 : i32
    return %c0_i32, %c0_i32_0 : i32, i32
  }
  func.func @transform_8(%arg0: i32) -> (i32, i32) {
    %c0_i32 = arith.constant 0 : i32
    %c0_i32_0 = arith.constant 0 : i32
    %c0_i32_1 = arith.constant 0 : i32
    return %c0_i32, %c0_i32_0 : i32, i32
  }
  func.func @transform_9(%arg0: i32) -> (i32, i32) {
    %c0_i32 = arith.constant 0 : i32
    %c0_i32_0 = arith.constant 0 : i32
    %c0_i32_1 = arith.constant 0 : i32
    return %c0_i32, %c0_i32_0 : i32, i32
  }
  func.func @transform_10(%arg0: i32) -> (i32, i32) {
    %c0_i32 = arith.constant 0 : i32
    %c0_i32_0 = arith.constant 0 : i32
    %c0_i32_1 = arith.constant 0 : i32
    return %c0_i32, %c0_i32_0 : i32, i32
  }
  func.func @transform_11(%arg0: i32) -> (i32, i32) {
    %c0_i32 = arith.constant 0 : i32
    %c0_i32_0 = arith.constant 0 : i32
    return %arg0, %c0_i32 : i32, i32
  }
}

</mosaic_0001>

<bundles_post_ra>
// kernel: encoder_forward.1
= control target key start
LH: loop header
LB: loop body
LE: loop exit
PB: predicated region body
PF: predicated region fallthrough
CT: control target
= control target key end

     0   :  { %16 = vsyncpa [#allocation3], 0  ;;  %s1888_s0 = inlined_call_operand.vmem [shape: f32[16,256], index: 0, kind: input, shape index: {}]   ;;  %s1889_s1 = inlined_call_operand.vmem [shape: bf16[256,256], index: 1, kind: input, shape index: {}]   ;;  %s1890_s2 = inlined_call_operand.vmem [shape: bf16[256,128], index: 2, kind: input, shape index: {}]   ;;  %s1891_s3 = inlined_call_operand.vmem [shape: bf16[128,64], index: 3, kind: input, shape index: {}]   ;;  %s1892_s4 = inlined_call_operand.vmem [shape: bf16[64,32], index: 4, kind: input, shape index: {}]   ;;  %s1893_s5 = inlined_call_operand.vmem [shape: bf16[32,64], index: 5, kind: input, shape index: {}]   ;;  %s1894_s6 = inlined_call_operand.vmem [shape: f32[1,256], index: 6, kind: input, shape index: {}]   ;;  %s1895_s7 = inlined_call_operand.vmem [shape: f32[1,128], index: 7, kind: input, shape index: {}]   ;;  %s1896_s8 = inlined_call_operand.vmem [shape: f32[1,64], index: 8, kind: input, shape index: {}]   ;;  %s1897_s9 = inlined_call_operand.vmem [shape: f32[1,32], index: 9, kind: input, shape index: {}]   ;;  %s1898_s10 = inlined_call_operand.vmem [shape: f32[1,64], index: 10, kind: input, shape index: {}]   ;;  %s1899_s11 = inlined_call_operand.hbm [shape: f32[16,64], index: 11, kind: output, shape index: {}]  }
   0x1   :  { %18 = vsyncpa [#allocation3 + $0x1], 0  ;;  %s1561_s17 = smov 0   ;;  %s1563_s18 = smov 0  }
   0x2   :  { %s1565_s19 = smov 0   ;;  %s1567_s20 = smov 0  }
   0x3 LB: > { %1901 = sst [smem:[#allocation5_spill]] %s1492_s19  ;;  %s1582_s21 = sadd.s32 4294967295, %s1496_s20   ;;  %s1496_s20 = sphi %s1567_s20, %s1909_s20   ;;  %s1492_s19 = sphi %s1565_s19, %s1906_s19   ;;  %s1488_s18 = sphi %s1563_s18, %s1908_s18   ;;  %s1484_s17 = sphi %s1561_s17, %s1907_s17  }
   0x4   : > { %s1156_s22 = sadd.s32 4294967294, %s1496_s20   ;;  %s1586_s23 = sadd.s32 1, %s1496_s20  }
   0x5   : > { %s267_s24 = sadd.s32 1, %s1492_s19  ;;  %s264_s25 = ssub.s32 %s1496_s20, %s1586_s23 }
   0x6   : > { %p277_p0 = scmp.ne.s32.totalorder %s1492_s19, %s1488_s18  ;;  %p265_p1 = scmp.eq.s32.totalorder %s264_s25, 0 }
   0x7   : > { %p278_p2 = scmp.eq.s32.totalorder %s1582_s21, 1  ;;  %p283_p3 = scmp.ne.s32.totalorder %s1488_s18, %s1484_s17 }
   0x8   : > { %p284_p4 = scmp.eq.s32.totalorder %s1156_s22, 1  ;;  %p1159_p7 = scmp.ge.s32.totalorder %s1496_s20, 1 }
   0x9   : > { %s1597_s26 = scalar_select %p265_p1, %s1492_s19, %s267_s24  }
   0xa   : > { %p1599_p5 = por %p278_p2, %p277_p0  ;;  %p1603_p6 = por %p284_p4, %p283_p3 }
   0xb   : > { %1902 = sst [smem:[#allocation6_spill]] %s1597_s26  ;;  %p340_p8 = scmp.lt.s32.totalorder %s1496_s20, 3 }
   0xd   : > { %p341_p9 = pnand %p1159_p7, %p340_p8 }
   0xe   : > { %v1356_v0 = vld [vmem:[%s1889_s1 + $0x4] ss:$8 sps:$4 sm:$0xff] (!%p341_p9)   ;;  %v1358_v1 = vld [vmem:[%s1889_s1] ss:$8 sps:$4 sm:$0xff] (!%p341_p9)   ;;  %v1359_v2 = vld [vmem:[%s1889_s1 + $0x14] ss:$8 sps:$4 sm:$0xff] (!%p341_p9)   ;;  %v424_v53 = vlaneseq (!%p341_p9) }
   0xf   : > { %344 = sbr.rel (%p341_p9) target bundleno = 1186 (0x4a2), region = 64  ;;  %594 = vmatprep.subr.bf16.mxu0 (!%p341_p9), %v1356_v0  ;;  %v1361_v3 = vld [vmem:[%s1889_s1 + $0x10] ss:$8 sps:$4 sm:$0xff] (!%p341_p9)   ;;  %v1362_v4 = vld [vmem:[%s1889_s1 + $0x24] ss:$8 sps:$4 sm:$0xff] (!%p341_p9)   ;;  %p380_p10 = scmp.lt.s32.totalorder (!%p341_p9), %s1582_s21, 1 }
  0x10   : > { %595 = vmatpush1.bf16.msra.mxu0 (!%p341_p9), %v1358_v1  ;;  %v1364_v5 = vld [vmem:[%s1889_s1 + $0x20] ss:$8 sps:$4 sm:$0xff] (!%p341_p9)   ;;  %v1365_v6 = vld [vmem:[%s1889_s1 + $0x34] ss:$8 sps:$4 sm:$0xff] (!%p341_p9)   ;;  %v1367_v7 = vld [vmem:[%s1889_s1 + $0x30] ss:$8 sps:$4 sm:$0xff] (!%p341_p9)  }
  0x11   : > { %596 = vmatprep.subr.bf16.mxu0 (!%p341_p9), %v1359_v2  ;;  %v1368_v8 = vld [vmem:[%s1889_s1 + $0x44] ss:$8 sps:$4 sm:$0xff] (!%p341_p9)   ;;  %v1370_v9 = vld [vmem:[%s1889_s1 + $0x40] ss:$8 sps:$4 sm:$0xff] (!%p341_p9)   ;;  %v1371_v10 = vld [vmem:[%s1889_s1 + $0x54] ss:$8 sps:$4 sm:$0xff] (!%p341_p9)  }
  0x12   : > { %v1373_v11 = vld [vmem:[%s1889_s1 + $0x50] ss:$8 sps:$4 sm:$0xff] (!%p341_p9)   ;;  %v1374_v12 = vld [vmem:[%s1889_s1 + $0x64] ss:$8 sps:$4 sm:$0xff] (!%p341_p9)   ;;  %v1376_v13 = vld [vmem:[%s1889_s1 + $0x60] ss:$8 sps:$4 sm:$0xff] (!%p341_p9)  }
  0x13   : > { %v1377_v15 = vld [vmem:[%s1889_s1 + $0x74] ss:$8 sps:$4 sm:$0xff] (!%p341_p9)   ;;  %v1404_v17 = vld [vmem:[%s1890_s2 + $0x40] sm:$0xff] (!%p341_p9)   ;;  %v1406_v19 = vld [vmem:[%s1890_s2 + $0x48] sm:$0xff] (!%p341_p9)   ;;  %v1498_v52 = vmov (!%p341_p9), 0.0   ;;  %v425_v54 = vshrl.u32 (!%p341_p9), %v424_v53, 7 }
  0x14   : > { %597 = vmatpush1.bf16.msra.mxu0 (!%p341_p9), %v1361_v3  ;;  %v1405_v18 = vld [vmem:[%s1890_s2] sm:$0xff] (!%p341_p9)   ;;  %v1379_v20 = vld [vmem:[%s1889_s1 + $0x70] ss:$8 sps:$4 sm:$0xff] (!%p341_p9)   ;;  %1236 = vmatprep.subr.bf16.mxu1 (!%p341_p9), %v1404_v17  ;;  %v1407_v21 = vld [vmem:[%s1890_s2 + $0x8] sm:$0xff] (!%p341_p9)   ;;  %vm1499_vm0 = vmmov (!%p341_p9), 0   ;;  %vm968_vm1 = vcmask (!%p341_p9), 523264  }
  0x15   : > { %598 = vmatprep.subr.bf16.mxu0 (!%p341_p9), %v1362_v4  ;;  %1237 = vmatpush3.bf16.msra.mxu1 (!%p341_p9), %v1405_v18  ;;  %v1408_v22 = vld [vmem:[%s1890_s2 + $0x50] sm:$0xff] (!%p341_p9)   ;;  %v1380_v23 = vld [vmem:[%s1889_s1 + $0x84] ss:$8 sps:$4 sm:$0xff] (!%p341_p9)   ;;  %v1382_v24 = vld [vmem:[%s1889_s1 + $0x80] ss:$8 sps:$4 sm:$0xff] (!%p341_p9)   ;;  %v426_v55 = vsub.s32 (!%p341_p9), 0, %v425_v54 }
  0x16   : > { %s381_s16 = scalar_select %p380_p10, %s1582_s21, 1  ;;  %1238 = vmatprep.subr.bf16.mxu1 %v1406_v19  ;;  %v1409_v25 = vld [vmem:[%s1890_s2 + $0x10] sm:$0xff]   ;;  %v1410_v26 = vld [vmem:[%s1890_s2 + $0x58] sm:$0xff]   ;;  %v1386_v30 = vld [vmem:[%s1889_s1 + $0xa4] ss:$8 sps:$4 sm:$0xff]   ;;  %v430_v57 = vsub.s32 1, %v425_v54 }
  0x17   : > { %v1383_v27 = vld [vmem:[%s1889_s1 + $0x94] ss:$8 sps:$4 sm:$0xff]   ;;  %v1385_v28 = vld [vmem:[%s1889_s1 + $0x90] ss:$8 sps:$4 sm:$0xff]   ;;  %v1412_v31 = vld [vmem:[%s1890_s2 + $0x60] sm:$0xff]   ;;  %vm1037_vm2 = vcmask 261120  }
  0x18   : > { %599 = vmatpush1.bf16.msra.mxu0 %v1364_v5  ;;  %s1235_s30 = sshll.u32 %s381_s16, 4  ;;  %v1411_v29 = vld [vmem:[%s1890_s2 + $0x18] sm:$0xff]   ;;  %v1413_v32 = vld [vmem:[%s1890_s2 + $0x20] sm:$0xff]   ;;  %v1414_v34 = vld [vmem:[%s1890_s2 + $0x68] sm:$0xff]   ;;  %s377_s26 = sand.u32 1, %s1488_s18  }
  0x19   : > { %600 = vmatprep.subr.bf16.mxu0 %v1365_v6  ;;  %s1647_s15 = scalar_lea.vmem %s1888_s0, %s1235_s30  ;;  %1239 = vmatpush3.bf16.msra.mxu1 %v1407_v21  ;;  %v1388_v33 = vld [vmem:[%s1889_s1 + $0xa0] ss:$8 sps:$4 sm:$0xff]   ;;  %v1389_v35 = vld [vmem:[%s1889_s1 + $0xb4] ss:$8 sps:$4 sm:$0xff]   ;;  %v1391_v37 = vld [vmem:[%s1889_s1 + $0xb0] ss:$8 sps:$4 sm:$0xff]  }
  0x1a   : > { %v387_v14 = vld [vmem:[%s1647_s15 + $0x8] sm:$0xff]  ;;  %1240 = vmatprep.subr.bf16.mxu1 %v1408_v22  ;;  %v1395_v40 = vld [vmem:[%s1889_s1 + $0xd4] ss:$8 sps:$4 sm:$0xff]   ;;  %v1397_v41 = vld [vmem:[%s1889_s1 + $0xd0] ss:$8 sps:$4 sm:$0xff]   ;;  %s1160_s30 = sshll.u32 %s377_s26, 3 }
  0x1b   : > { %v389_v16 = vpack.c.bf16 %v387_v14, %v387_v14  ;;  %v1415_v36 = vld [vmem:[%s1890_s2 + $0x28] sm:$0xff]   ;;  %v1401_v44 = vld [vmem:[%s1889_s1 + $0xf4] ss:$8 sps:$4 sm:$0xff]   ;;  %v1403_v45 = vld [vmem:[%s1889_s1 + $0xf0] ss:$8 sps:$4 sm:$0xff]   ;;  %s1232_s22 = sshll.u32 %s1582_s21, 7 }
  0x1c   : > { %601 = vmatpush1.bf16.msra.mxu0 %v1367_v7  ;;  %v1392_v38 = vld [vmem:[%s1889_s1 + $0xc4] ss:$8 sps:$4 sm:$0xff]   ;;  %v1394_v39 = vld [vmem:[%s1889_s1 + $0xc0] ss:$8 sps:$4 sm:$0xff]   ;;  %v1416_v48 = vld [vmem:[%s1890_s2 + $0x70] sm:$0xff]   ;;  %s379_s24 = scalar_lea.vmem [#allocation2], %s1160_s30  ;;  %s1845_s16 = scalar_lea.hbm %s1899_s11, %s1232_s22 }
  0x1d   : > { %602 = vmatprep.subr.bf16.mxu0 %v1368_v8  ;;  %626 = vmatprep.mubr.bf16.mxu0 %v389_v16  ;;  %v1398_v42 = vld [vmem:[%s1889_s1 + $0xe4] ss:$8 sps:$4 sm:$0xff]   ;;  %v1400_v43 = vld [vmem:[%s1889_s1 + $0xe0] ss:$8 sps:$4 sm:$0xff]   ;;  %v1417_v49 = vld [vmem:[%s1890_s2 + $0x30] sm:$0xff]   ;;  %s1097_s19 = sshll.u32 %s379_s24, 4  ;;  %s1847_s19 = int_to_ptr.vmem [resolvable:$true] %s1097_s19 }
  0x1e   : > { %1241 = vmatpush3.bf16.msra.mxu1 %v1409_v25  ;;  %v386_v46 = vld [vmem:[%s1647_s15] sm:$0xff]  ;;  %v1418_v50 = vld [vmem:[%s1890_s2 + $0x78] sm:$0xff]   ;;  %v1421_v7 = vld [vmem:[%s1891_s3 + $0x8] sm:$0xff]   ;;  %s1084_s21 = scalar_lea.sflag [#allocation3], %s377_s26  ;;  %s1434_s12 = scalar_lea.vmem %s1847_s19, 128 }
  0x1f   : > { %1242 = vmatprep.subr.bf16.mxu1 %v1410_v26  ;;  %v388_v47 = vpack.c.bf16 %v386_v46, %v386_v46  ;;  %v1419_v51 = vld [vmem:[%s1890_s2 + $0x38] sm:$0xff]   ;;  %v422_v56 = vld [vmem:[%s1894_s6] sm:$0x3]  ;;  %v1422_v8 = vld [vmem:[%s1891_s3 + $0x10] sm:$0xff]   ;;  %p1435_p11 = scmp.ne.s32.totalorder %s1847_s19, %s1434_s12  ;;  %s1500_s15 = smov [#allocation2]  }
  0x20   : > { %603 = vmatpush1.bf16.msra.mxu0 %v1370_v9  ;;  %v427_v58 = vrot.slane %v422_v56, %v426_v55  ;;  %v431_v59 = vrot.slane %v422_v56, %v430_v57  ;;  %v1420_v5 = vld [vmem:[%s1891_s3] sm:$0xff]   ;;  %v1423_v9 = vld [vmem:[%s1891_s3 + $0x18] sm:$0xff]   ;;  %v1430_v25 = vld [vmem:[%s1892_s4 + $0x10] sm:$0xff]   ;;  %s1438_s30 = sshll.u32 %s1500_s15, 4  ;;  %s1439_s30 = int_to_ptr.vmem [resolvable:$false] %s1438_s30 }
  0x21   : > { %604 = vmatprep.subr.bf16.mxu0 %v1371_v10  ;;  %v1424_v10 = vld [vmem:[%s1891_s3 + $0x20] sm:$0xff]   ;;  %v1431_v26 = vld [vmem:[%s1892_s4 + $0x18] sm:$0xff]   ;;  %p1436_p12 = pnand %p1435_p11, %p1599_p5  ;;  %s1440_s13 = scalar_lea.vmem %s1439_s30, 256 }
  0x22   : > { %1243 = vmatpush3.bf16.msra.mxu1 %v1411_v29  ;;  %v1428_v14 = vld [vmem:[%s1892_s4] sm:$0xff]   ;;  %p1441_p0 = scmp.lt.s32.totalorder %s1847_s19, %s1439_s30  ;;  %p1442_p1 = scmp.lt.s32.totalorder %s1440_s13, %s1434_s12 }
  0x23   : > { %1244 = vmatprep.subr.bf16.mxu1 %v1412_v31  ;;  %v1195_v17 = vld [vmem:[%s1895_s7] ss:$0 sm:$0xff]  ;;  %p1437_p13 = pneg %p1436_p12 }
  0x24   : > { %605 = vmatpush1.bf16.msra.mxu0 %v1373_v11  ;;  %v1425_v11 = vld [vmem:[%s1891_s3 + $0x28] sm:$0xff]   ;;  %p1443_p2 = por %p1442_p1, %p1441_p0 }
  0x25   : > { %606 = vmatprep.subr.bf16.mxu0 %v1374_v12  ;;  %v1426_v12 = vld [vmem:[%s1891_s3 + $0x30] sm:$0xff]  }
  0x26   : > { %1245 = vmatpush3.bf16.msra.mxu1 %v1413_v32  ;;  %p1444_p3 = pnand %p1443_p2, %p1437_p13 }
  0x27   : > { %1246 = vmatprep.subr.bf16.mxu1 %v1414_v34 }
  0x28   : > { %607 = vmatpush1.bf16.msra.mxu0 %v1376_v13  ;;  %v1427_v13 = vld [vmem:[%s1891_s3 + $0x38] sm:$0xff]  }
  0x29   : > { %608 = vmatprep.subr.bf16.mxu0 %v1377_v15  ;;  %v1429_v15 = vld [vmem:[%s1892_s4 + $0x8] sm:$0xff]  }
  0x2a   : > { %1247 = vmatpush3.bf16.msra.mxu1 %v1415_v36  ;;  %v1433_v36 = vld [vmem:[%s1893_s5 + $0x8] sm:$0xff]  }
  0x2b   : > { %1248 = vmatprep.subr.bf16.mxu1 %v1416_v48 }
  0x2c   : > { %609 = vmatpush1.bf16.msra.mxu0 %v1379_v20 }
  0x2d   : > { %610 = vmatprep.subr.bf16.mxu0 %v1380_v23 }
  0x2e   : > { %1249 = vmatpush3.bf16.msra.mxu1 %v1417_v49 }
  0x2f   : > { %1250 = vmatprep.subr.bf16.mxu1 %v1418_v50 }
  0x30   : > { %611 = vmatpush1.bf16.msra.mxu0 %v1382_v24 }
  0x31   : > { %612 = vmatprep.subr.bf16.mxu0 %v1383_v27  ;;  %v1432_v27 = vld [vmem:[%s1893_s5] sm:$0xff]  }
  0x32   : > { %1251 = vmatpush3.bf16.msra.mxu1 %v1419_v51 }
  0x33   : > { %1275 = vmatprep.subr.bf16.mxu1 %v1498_v52 }
  0x34   : > { %613 = vmatpush1.bf16.msra.mxu0 %v1385_v28  ;;  %v1212_v28 = vld [vmem:[%s1896_s8] ss:$0 sm:$0xff] }
  0x35   : > { %614 = vmatprep.subr.bf16.mxu0 %v1386_v30 }
  0x38   : > { %615 = vmatpush1.bf16.msra.mxu0 %v1388_v33 }
  0x39   : > { %616 = vmatprep.subr.bf16.mxu0 %v1389_v35 }
  0x3c   : > { %617 = vmatpush1.bf16.msra.mxu0 %v1391_v37  ;;  %v1221_v37 = vld [vmem:[%s1897_s9] ss:$0 sm:$0xff] }
  0x3d   : > { %618 = vmatprep.subr.bf16.mxu0 %v1392_v38 }
  0x40   : > { %619 = vmatpush1.bf16.msra.mxu0 %v1394_v39 }
  0x41   : > { %620 = vmatprep.subr.bf16.mxu0 %v1395_v40 }
  0x44   : > { %621 = vmatpush1.bf16.msra.mxu0 %v1397_v41 }
  0x45   : > { %622 = vmatprep.subr.bf16.mxu0 %v1398_v42 }
  0x48   : > { %623 = vmatpush1.bf16.msra.mxu0 %v1400_v43 }
  0x49   : > { %624 = vmatprep.subr.bf16.mxu0 %v1401_v44 }
  0x4c   : > { %625 = vmatpush1.bf16.msra.mxu0 %v1403_v45  ;;  %v1227_v45 = vld [vmem:[%s1898_s10] ss:$0 sm:$0xff] }
  0x4d   : > { %1295 = vmatprep.subr.bf16.mxu0 %v1498_v52 }
  0x4f   : > { %627 = vmatmul.mubr.bf16.vlgmr.msra.gmra.mrb[0].mxu0 %v388_v47 }
  0x50   : > { %1303 = vmatprep.mubr.msk.bf16.mxu0 %vm1499_vm0, %v1498_v52  ;;  %1296 = vmatpush3.bf16.msra.mxu0 %v1428_v14 }
  0x51   : > { %1297 = vmatprep.subr.bf16.mxu0 %v1498_v52 }
  0x54   : > { %1298 = vmatpush3.bf16.msra.mxu0 %v1429_v15 }
  0x55   : > { %1299 = vmatprep.subr.bf16.mxu0 %v1498_v52 }
  0x58   : > { %1300 = vmatpush3.bf16.msra.mxu0 %v1430_v25 }
  0x59   : > { %1301 = vmatprep.subr.bf16.mxu0 %v1498_v52 }
  0x5c   : > { %1302 = vmatpush3.bf16.msra.mxu0 %v1431_v26 }
 0x122   : > { %v628_v60 = vpop.f32.mrb[0].mxu0 }
 0x123   : > { %v629_v61 = vadd.f32 %v628_v60, %v427_v58  ;;  %v630_v62 = vpop.f32.mrb[1].mxu0 }
 0x124   : > { %v631_v63 = vadd.f32 %v630_v62, %v431_v59  ;;  %v632_v0 = vpop.f32.mrb[2].mxu0 }
 0x125   : > { %v635_v1 = vmax.f32 %v629_v61, 0.0  ;;  %v633_v2 = vpop.f32.mrb[3].mxu0 }
 0x126   : > { %v636_v3 = vmax.f32 %v631_v63, 0.0 }
 0x127   : > { %v637_v6 = vpack.c.bf16 %v635_v1, %v635_v1 }
 0x128   : > { %v638_v4 = vpack.c.bf16 %v636_v3, %v636_v3 }
 0x12a   : > { %806 = vmatprep.mubr.bf16.mxu1 %v638_v4 }
 0x12b   : > { %807 = vmatmul.mubr.bf16.vlgmr.msra.gmra.mrb[0].mxu1 %v637_v6 }
 0x12c   : > { %1276 = vmatpush3.bf16.msra.mxu1 %v1420_v5  ;;  %1291 = vmatprep.mubr.msk.bf16.mxu1 %vm1499_vm0, %v1498_v52 }
 0x12d   : > { %1277 = vmatprep.subr.bf16.mxu1 %v1498_v52 }
 0x130   : > { %1278 = vmatpush3.bf16.msra.mxu1 %v1421_v7 }
 0x131   : > { %1279 = vmatprep.subr.bf16.mxu1 %v1498_v52 }
 0x134   : > { %1280 = vmatpush3.bf16.msra.mxu1 %v1422_v8 }
 0x135   : > { %1281 = vmatprep.subr.bf16.mxu1 %v1498_v52 }
 0x138   : > { %1282 = vmatpush3.bf16.msra.mxu1 %v1423_v9 }
 0x139   : > { %1283 = vmatprep.subr.bf16.mxu1 %v1498_v52 }
 0x13c   : > { %1284 = vmatpush3.bf16.msra.mxu1 %v1424_v10 }
 0x13d   : > { %1285 = vmatprep.subr.bf16.mxu1 %v1498_v52 }
 0x140   : > { %1286 = vmatpush3.bf16.msra.mxu1 %v1425_v11 }
 0x141   : > { %1287 = vmatprep.subr.bf16.mxu1 %v1498_v52 }
 0x144   : > { %1288 = vmatpush3.bf16.msra.mxu1 %v1426_v12 }
 0x145   : > { %1289 = vmatprep.subr.bf16.mxu1 %v1498_v52 }
 0x148   : > { %1290 = vmatpush3.bf16.msra.mxu1 %v1427_v13 }
 0x149   : > { %1307 = vmatprep.subr.bf16.mxu1 %v1498_v52 }
 0x1fe   : > { %v1252_v16 = vpop.f32.mrb[0].mxu1 }
 0x1ff   : > { %v1253_v18 = vpop.f32.mrb[1].mxu1 }
 0x200   : > { %v1254_v19 = vadd.f32 %v1253_v18, %v1252_v16  ;;  %v1255_v20 = vpop.f32.mrb[2].mxu1 }
 0x201   : > { %v1256_v21 = vpop.f32.mrb[3].mxu1 }
 0x202   : > { %v809_v22 = vadd.f32 %v1254_v19, %v1195_v17 }
 0x204   : > { %v814_v23 = vmax.f32 %v809_v22, 0.0 }
 0x206   : > { %v815_v24 = vpack.c.bf16 %v814_v23, %v814_v23 }
 0x208   : > { %1292 = vmatmul.mubr.bf16.vlgmr.msra.gmra.mrb[4].mxu1 %v815_v24 }
 0x209   : > { %1311 = vmatprep.mubr.msk.bf16.mxu1 %vm1499_vm0, %v1498_v52  ;;  %1308 = vmatpush3.bf16.msra.mxu1 %v1432_v27 }
 0x20a   : > { %1309 = vmatprep.subr.bf16.mxu1 %v1498_v52 }
 0x20d   : > { %1310 = vmatpush3.bf16.msra.mxu1 %v1433_v36 }
 0x2db   : > { %v921_v29 = vpop.f32.mrb[4].mxu1 }
 0x2dc   : > { %v922_v30 = vadd.f32 %v1212_v28, %v921_v29  ;;  %v1293_v31 = vpop.f32.mrb[5].mxu1 }
 0x2dd   : > { %v924_v32 = vpop.f32.mrb[6].mxu1 }
 0x2de   : > { %v927_v33 = vmax.f32 %v922_v30, 0.0  ;;  %v1294_v34 = vpop.f32.mrb[7].mxu1 }
 0x2e0   : > { %v928_v35 = vpack.c.bf16 %v927_v33, %v927_v33 }
 0x2e2   : > { %1304 = vmatmul.mubr.msk.bf16.vlgmr.msra.gmra.mrb[4].mxu0 %vm968_vm1, %v928_v35 }
 0x3b5   : > { %v1006_v38 = vpop.f32.mrb[4].mxu0 }
 0x3b6   : > { %v1007_v39 = vadd.f32 %v1221_v37, %v1006_v38  ;;  %v1305_v40 = vpop.f32.mrb[5].mxu0 }
 0x3b7   : > { %v1009_v41 = vpop.f32.mrb[6].mxu0 }
 0x3b8   : > { %v1012_v42 = vmax.f32 %v1007_v39, 0.0  ;;  %v1306_v43 = vpop.f32.mrb[7].mxu0 }
 0x3ba   : > { %v1013_v44 = vpack.c.bf16 %v1012_v42, %v1012_v42 }
 0x3bc   : > { %1312 = vmatmul.mubr.msk.bf16.vlgmr.msra.gmra.mrb[8].mxu1 %vm1037_vm2, %v1013_v44 }
 0x48f   : > { %v1075_v46 = vpop.f32.mrb[8].mxu1 }
 0x490   : > { %v1076_v47 = vadd.f32 %v1227_v45, %v1075_v46  ;;  %v1313_v48 = vpop.f32.mrb[9].mxu1 }
 0x491   : > { %v1078_v49 = vpop.f32.mrb[10].mxu1 }
 0x492   : > { %v1081_v50 = vmax.f32 %v1076_v47, 0.0  ;;  %v1314_v51 = vpop.f32.mrb[11].mxu1 }
 0x494   : > { %1082 = vst.msk [vmem:[%s379_s24] sm:$0xff] %vm968_vm1, %v1081_v50 }
 0x495   : > { %1447 = shalt.err (!%p1444_p3)
}
 0x496   : > { %s1448_s26 = scalar_lea.hbm %s1845_s16, 128  ;;  %s1452_s24 = scalar_lea.hbm %s1899_s11, 256 }
 0x497   : > { %p1449_p4 = scmp.ne.s32.totalorder %s1845_s16, %s1448_s26  ;;  %p1453_p9 = scmp.lt.u32.totalorder %s1845_s16, %s1899_s11 }
 0x498   : > { %p1454_p10 = scmp.lt.u32.totalorder %s1452_s24, %s1448_s26  ;;  %p1456_p12 = scmp.lt.u32.totalorder %s1448_s26, %s1845_s16 }
 0x499   : > { %p1450_p7 = pnand %p1449_p4, %p1599_p5 }
 0x49a   : > { %p1455_p11 = por %p1454_p10, %p1453_p9 }
 0x49b   : > { %p1451_p8 = pneg %p1450_p7 }
 0x49c   : > { %p1457_p13 = por %p1456_p12, %p1455_p11 }
 0x49e   : > { %p1458_p0 = pnand %p1457_p13, %p1451_p8 }
 0x4a0   : > { %1461 = shalt.err (!%p1458_p0)
}
 0x4a1   : > { %1315 = dma.vmem_to_hbm [thread:$0]  (%p1599_p5), %s1847_s19, 128, %s1845_s16, %s1084_s21  }
 0x4a2 PF: > { %p1321_p1 = scmp.ge.s32.totalorder %s1496_s20, 2  ;;  %s1109_s12 = sand.u32 1, %s1484_s17  }
 0x4a3   : > { %s1110_s15 = scalar_lea.sflag [#allocation3], %s1109_s12 }
 0x4a4   : > { %p1318_p2 = pnand %p1321_p1, %p1603_p6 }
 0x4a6   : > { %1479 = dma.done.wait (!%p1318_p2), %s1110_s15, 128  }
 0x4a7   : > { %1481 = vsyncadd (!%p1318_p2), %s1110_s15, 4294967168  ;;  %s1905_s30 = sld [smem:[#allocation5_spill]]  ;;  %s1906_s19 = sld [smem:[#allocation6_spill]] }
 0x4a8   : > { %p21_p3 = scmp.ge.s32.totalorder %s1586_s23, 4   ;;  %s1907_s17 = smov %s1488_s18 }
 0x4a9   : > { %s1909_s20 = smov %s1586_s23 }
 0x4aa   :  { %23 = sbr.rel (!%p21_p3) target bundleno = 3 (0x3), region = 99 }
 0x4ad   : > { %s1908_s18 = smov %s1905_s30 }
 0x4b1   :  { %1115 = vsyncpa [#allocation3], 1 }
 0x4b2   :  { %1117 = vsyncpa [#allocation3 + $0x1], 1 }

</bundles_post_ra>
